<compile_context>
chip_gen: v7x
topology: tpu7x:2x2x1
jax: 0.10.0
libtpu: 0.0.40
codegen_flags: <defaults>
</compile_context>

<pallas_src>
import jax
import jax.numpy as jnp
from jax.experimental import pallas as pl
from jax.experimental.pallas import tpu as pltpu


_MAX_LANE_COLS = 8192            # widest lane axis we will try (multiple of 128)


# ---------------------------------------------------------------------------
# Generation-aware chip query (VMEM capacity, TensorCores per chip).
# ---------------------------------------------------------------------------
def _chip_info():
    vmem_bytes = 128 << 20       # v5e / v6e physical VMEM default
    num_tc = 1
    try:
        info = pltpu.get_tpu_info()
        vmem_bytes = int(getattr(info, "vmem_capacity_bytes", vmem_bytes))
    except Exception:
        pass
    try:
        kind = jax.local_devices()[0].device_kind.lower()
        if "v7" in kind or "7x" in kind:
            num_tc = 2
            vmem_bytes = min(vmem_bytes, 64 << 20)
    except Exception:
        pass
    if vmem_bytes <= (64 << 20):
        num_tc = max(num_tc, 2)  # 64-MiB-VMEM parts are the 2-TC generation
    return vmem_bytes, num_tc


def _sublane_grain(dtype) -> int:
    """Second-to-last block-dim granularity by element width."""
    return {4: 8, 2: 16, 1: 32}.get(jnp.dtype(dtype).itemsize, 8)


def _lane_dense_2d(x: jax.Array) -> jax.Array:
    """Reshape to (rows, cols) with cols a large multiple of 128 when possible."""
    total = int(x.size)
    grain = _sublane_grain(x.dtype)
    chosen = None
    first_fit = None
    c = (min(total, _MAX_LANE_COLS) // 128) * 128
    while c >= 128:
        if total % c == 0:
            if first_fit is None:
                first_fit = c
            if (total // c) % grain == 0:
                chosen = c          # lane-dense AND sublane-aligned rows
                break
        c -= 128
    if chosen is None:
        chosen = first_fit          # lane-dense, rows ragged (full-dim blocks)
    if chosen is None:
        # total not a multiple of 128: fall back to original trailing dim
        chosen = x.shape[-1] if x.ndim >= 1 else 1
    return x.reshape(total // chosen, chosen)


# ----------------------------------------------------------------------------
# Fast path: ONE pallas_call for all inputs; all HBM->HBM DMAs started before
# any wait (concurrent), no VMEM round-trip, no VPU load/store work.
# ----------------------------------------------------------------------------
def _dma_chunks_for(x: jax.Array, num_tc: int) -> int:
    """How many leading-axis chunks to split this tensor's DMA into (v7x)."""
    if num_tc < 2 or x.ndim < 1:
        return 1
    nbytes = int(x.size) * jnp.dtype(x.dtype).itemsize
    if nbytes < (512 << 10):        # not worth extra descriptors for small maps
        return 1
    lead = int(x.shape[0])
    for c in (4, 3, 2):
        if lead >= c and lead % c == 0:
            return c
    return 1


def _make_batched_copy_kernel(n_inputs, plans):
    """plans[i] = (num_chunks, rows_per_chunk) for input i."""

    def kernel(*refs):
        in_refs = refs[:n_inputs]
        out_refs = refs[n_inputs:2 * n_inputs]
        sem = refs[2 * n_inputs]
        copies = []
        s = 0
        for i in range(n_inputs):
            chunks, rows_per = plans[i]
            for c in range(chunks):
                if chunks == 1:
                    src, dst = in_refs[i], out_refs[i]
                else:
                    sl = pl.ds(c * rows_per, rows_per)
                    src, dst = in_refs[i].at[sl], out_refs[i].at[sl]
                cp = pltpu.make_async_copy(src, dst, sem.at[s])
                cp.start()
                copies.append(cp)
                s += 1
        for cp in copies:           # every DMA already in flight
            cp.wait()

    return kernel


def _batched_dma_identity(inputs, num_tc):
    n = len(inputs)
    plans = []
    total_dmas = 0
    total_bytes = 0
    for x in inputs:
        chunks = _dma_chunks_for(x, num_tc)
        rows_per = (int(x.shape[0]) // chunks) if chunks > 1 else 0
        plans.append((chunks, rows_per))
        total_dmas += chunks
        total_bytes += int(x.size) * jnp.dtype(x.dtype).itemsize

    kernel = _make_batched_copy_kernel(n, plans)
    return pl.pallas_call(
        kernel,
        out_shape=tuple(jax.ShapeDtypeStruct(x.shape, x.dtype) for x in inputs),
        in_specs=[pl.BlockSpec(memory_space=pl.ANY)] * n,
        out_specs=tuple(pl.BlockSpec(memory_space=pl.ANY) for _ in inputs),
        scratch_shapes=[pltpu.SemaphoreType.DMA((total_dmas,))],
        cost_estimate=pl.CostEstimate(
            flops=0, transcendentals=0, bytes_accessed=2 * total_bytes),
    )(*inputs)


# ----------------------------------------------------------------------------
# Pipeline template: lane-dense tiled VMEM copy (what a concrete subclass
# would add its compute into).  Generation-aware block sizing.
# ----------------------------------------------------------------------------
def _copy_kernel(x_ref, o_ref):
    o_ref[...] = x_ref[...]


def _pick_tile_rows(rows, cols, itemsize, grain, block_bytes, num_tc):
    """Largest divisor of `rows` (multiple of `grain`) within the per-block
    byte budget; on 2-TC parts prefer >=2 grid steps per core."""
    if cols % 128 != 0:
        return rows                  # must use full-array block (8,128 rule)
    budget_rows = max(grain, block_bytes // max(1, cols * itemsize))
    limit = min(rows, budget_rows)
    divisors = [d for d in range(grain, limit + 1, grain) if rows % d == 0]
    if not divisors:
        return rows                  # full-dim block is always legal
    if num_tc >= 2:
        min_steps = 2 * num_tc       # >=2 steps/core keeps per-core pipelining
        good = [d for d in divisors if rows // d >= min_steps]
        if good:
            return good[-1]
    return divisors[-1]


def _tiled_identity_2d(x2d: jax.Array) -> jax.Array:
    rows, cols = x2d.shape
    itemsize = jnp.dtype(x2d.dtype).itemsize
    vmem_bytes, num_tc = _chip_info()
    if vmem_bytes <= (64 << 20):                       # v7x-class (64 MiB, 2 TC)
        block_bytes, vmem_limit = (4 << 20), (40 << 20)
    else:                                              # v5e / v6e (128 MiB, 1 TC)
        block_bytes, vmem_limit = (8 << 20), (64 << 20)
    tile_rows = _pick_tile_rows(rows, cols, itemsize, _sublane_grain(x2d.dtype),
                                block_bytes, num_tc)
    grid = (rows // tile_rows,)
    return pl.pallas_call(
        _copy_kernel,
        out_shape=jax.ShapeDtypeStruct((rows, cols), x2d.dtype),
        grid_spec=pltpu.PrefetchScalarGridSpec(
            num_scalar_prefetch=0,
            grid=grid,
            in_specs=[pl.BlockSpec((tile_rows, cols), lambda i: (i, 0))],
            out_specs=pl.BlockSpec((tile_rows, cols), lambda i: (i, 0)),
        ),
        compiler_params=pltpu.CompilerParams(
            dimension_semantics=("parallel",),
            vmem_limit_bytes=vmem_limit,
        ),
        cost_estimate=pl.CostEstimate(
            flops=0, transcendentals=0,
            bytes_accessed=2 * rows * cols * itemsize),
    )(x2d)


class FeatureExtractor:
    """JAX/Pallas port of torchreid.ops.fpn.FeatureExtractor (abstract base)."""

    def __init__(self, **kwargs):
        # Metadata exactly as in the PyTorch __init__ (no parameters).
        self.dims_in = ()
        self.scales_in = ()
        self.dims_out = ()
        self.scales_out = ()

    def forward(self, *inputs):
        # Base class defines no computation; pass every feature map through a
        # single batched pallas_call issuing concurrent HBM->HBM DMAs.
        # (A true zero-cost identity would return `inputs` unchanged or alias
        # donated buffers via input_output_aliases; not done here because it
        # would consume the caller's input buffers.)
        if not inputs:
            return ()
        _, num_tc = _chip_info()
        outs = _batched_dma_identity(list(inputs), num_tc)
        return outs[0] if len(inputs) == 1 else tuple(outs)

    __call__ = forward


if __name__ == "__main__":
    key = jax.random.PRNGKey(0)
    k1, k2 = jax.random.split(key)
    # Two FPN-style feature levels (NCHW) at small shapes.
    x1 = jax.random.normal(k1, (2, 4, 16, 16), dtype=jnp.float32)
    x2 = jax.random.normal(k2, (2, 4, 8, 8), dtype=jnp.float32)

    module = FeatureExtractor()

    # Fast path: one batched pallas_call, all HBM->HBM DMAs in flight at once.
    y1, y2 = jax.block_until_ready(module(x1, x2))
    assert y1.shape == x1.shape and y1.dtype == x1.dtype
    assert y2.shape == x2.shape and y2.dtype == x2.dtype
    assert bool(jnp.all(y1 == x1)) and bool(jnp.all(y2 == x2))

    # Single-input call path.
    y_single = jax.block_until_ready(module(x1))
    assert y_single.shape == x1.shape and bool(jnp.all(y_single == x1))

    # Pipeline template: lane-dense tiled VMEM copy, verified on the same data.
    x2d = _lane_dense_2d(x1)
    yt = jax.block_until_ready(_tiled_identity_2d(x2d)).reshape(x1.shape)
    assert bool(jnp.all(yt == x1))

    print("KERNEL_OK")
</pallas_src>

<mosaic_0001>
module attributes {stable_mosaic.version = 11 : i64} {
  func.func @kernel(%arg0: memref<2x4x16x16xf32, #tpu.memory_space<any>>, %arg1: memref<2x4x8x8xf32, #tpu.memory_space<any>>, %arg2: memref<2x4x16x16xf32, #tpu.memory_space<any>>, %arg3: memref<2x4x8x8xf32, #tpu.memory_space<any>>, %arg4: memref<2x!tpu.dma_semaphore, #tpu.memory_space<semaphore_mem>>) attributes {dimension_semantics = [], scalar_prefetch = 0 : i64, scratch_operands = 1 : i64, tpu.core_type = #tpu.core_type<tc>} {
    %c0_i32 = arith.constant 0 : i32
    %0 = tpu.memref_slice %arg4[%c0_i32] : memref<2x!tpu.dma_semaphore, #tpu.memory_space<semaphore_mem>> -> memref<1x!tpu.dma_semaphore, #tpu.memory_space<semaphore_mem>>
    %1 = tpu.memref_squeeze %0 : memref<1x!tpu.dma_semaphore, #tpu.memory_space<semaphore_mem>> -> memref<!tpu.dma_semaphore, #tpu.memory_space<semaphore_mem>>
    tpu.enqueue_dma source(%arg0 : memref<2x4x16x16xf32, #tpu.memory_space<any>>) target(%arg2 : memref<2x4x16x16xf32, #tpu.memory_space<any>>) target_semaphore(%1 : memref<!tpu.dma_semaphore, #tpu.memory_space<semaphore_mem>>)
    %c1_i32 = arith.constant 1 : i32
    %2 = tpu.memref_slice %arg4[%c1_i32] : memref<2x!tpu.dma_semaphore, #tpu.memory_space<semaphore_mem>> -> memref<1x!tpu.dma_semaphore, #tpu.memory_space<semaphore_mem>>
    %3 = tpu.memref_squeeze %2 : memref<1x!tpu.dma_semaphore, #tpu.memory_space<semaphore_mem>> -> memref<!tpu.dma_semaphore, #tpu.memory_space<semaphore_mem>>
    tpu.enqueue_dma source(%arg1 : memref<2x4x8x8xf32, #tpu.memory_space<any>>) target(%arg3 : memref<2x4x8x8xf32, #tpu.memory_space<any>>) target_semaphore(%3 : memref<!tpu.dma_semaphore, #tpu.memory_space<semaphore_mem>>)
    %c0_i32_0 = arith.constant 0 : i32
    %4 = tpu.memref_slice %arg4[%c0_i32_0] : memref<2x!tpu.dma_semaphore, #tpu.memory_space<semaphore_mem>> -> memref<1x!tpu.dma_semaphore, #tpu.memory_space<semaphore_mem>>
    %5 = tpu.memref_squeeze %4 : memref<1x!tpu.dma_semaphore, #tpu.memory_space<semaphore_mem>> -> memref<!tpu.dma_semaphore, #tpu.memory_space<semaphore_mem>>
    tpu.wait_dma2 semaphore(%5 : memref<!tpu.dma_semaphore, #tpu.memory_space<semaphore_mem>>) src(%arg0 : memref<2x4x16x16xf32, #tpu.memory_space<any>>) dst(%arg2 : memref<2x4x16x16xf32, #tpu.memory_space<any>>)
    %c1_i32_1 = arith.constant 1 : i32
    %6 = tpu.memref_slice %arg4[%c1_i32_1] : memref<2x!tpu.dma_semaphore, #tpu.memory_space<semaphore_mem>> -> memref<1x!tpu.dma_semaphore, #tpu.memory_space<semaphore_mem>>
    %7 = tpu.memref_squeeze %6 : memref<1x!tpu.dma_semaphore, #tpu.memory_space<semaphore_mem>> -> memref<!tpu.dma_semaphore, #tpu.memory_space<semaphore_mem>>
    tpu.wait_dma2 semaphore(%7 : memref<!tpu.dma_semaphore, #tpu.memory_space<semaphore_mem>>) src(%arg1 : memref<2x4x8x8xf32, #tpu.memory_space<any>>) dst(%arg3 : memref<2x4x8x8xf32, #tpu.memory_space<any>>)
    return
  }
}

</mosaic_0001>

<bundles_post_ra>
// kernel: tpu_custom_call.1
= control target key start
LH: loop header
LB: loop body
LE: loop exit
PB: predicated region body
PF: predicated region fallthrough
CT: control target
= control target key end

     0   :  { %s69_s12 = smov [#allocation2]   ;;  %s70_s13 = smov [#allocation3]   ;;  %s106_s0 = inlined_call_operand.hbm [shape: f32[2,4,16,16], index: 0, kind: input, shape index: {}]   ;;  %s107_s2 = inlined_call_operand.hbm [shape: f32[2,4,16,16], index: 2, kind: output, shape index: {0}]   ;;  %s108_s1 = inlined_call_operand.hbm [shape: f32[2,4,8,8], index: 1, kind: input, shape index: {}]   ;;  %s109_s3 = inlined_call_operand.hbm [shape: f32[2,4,8,8], index: 3, kind: output, shape index: {1}]  }
   0x1   :  { %s71_s14 = smov 0   ;;  %s72_s19 = smov [#allocation2 + $0x1]  }
   0x2   :  { %21 = dma.general %s106_s0, 2048, %s107_s2, %s69_s12, %s70_s13, [#allocation4], %s71_s14, 0  }
   0x3   :  { %s73_s20 = smov [#allocation5]  }
   0x4   :  { %35 = dma.general %s108_s1, 1024, %s109_s3, %s72_s19, %s73_s20, [#allocation6], %s71_s14, 0  }
   0x5   :  { %65 = dma.done.wait [#allocation2], 2048 }
   0x6   :  { %66 = vsyncadd [#allocation2], 4294965248 }
   0x7   :  { %67 = dma.done.wait [#allocation2 + $0x1], 1024 }
   0x8   :  { %68 = vsyncadd [#allocation2 + $0x1], 4294966272 }
   0x9   :  { %45 = vsyncmov [#allocation2] }
   0xc   :  { %s46_s25 = vpop.sfrf %45 }
   0xd   :  { %p58_p0 = scmp.ne.s32.totalorder %s46_s25, 0 }
   0xf   :  { %50 = shalt.err (%p58_p0)  }
  0x10   :  { %52 = vsyncmov [#allocation2 + $0x1] }
  0x13   :  { %s53_s26 = vpop.sfrf %52 }
  0x14   :  { %p59_p1 = scmp.ne.s32.totalorder %s53_s26, 0 }
  0x16   :  { %57 = shalt.err (%p59_p1)  }

</bundles_post_ra>
